<compile_context>
chip_gen: v5e
topology: v5e:2x2
jax: 0.10.0
libtpu: 0.0.40
codegen_flags: <defaults>
</compile_context>

<pallas_src>
import jax
import jax.numpy as jnp
from jax.experimental import pallas as pl
from jax.experimental.pallas import tpu as pltpu


def gcn_kernel(idx_ref, emb_ref, a_ref, invdeg_ref,
               w1l_ref, w1r_ref, b1_ref, al1_ref,
               w2l_ref, w2r_ref, b2_ref, al2_ref,
               wo_ref, bo_ref,
               o_ref):
    N = idx_ref.shape[0]
    S_pad = emb_ref.shape[0]                                     # 128 (padded skills)

    # ---- Embedding gather fused as a one-hot MXU matmul (full 128-lane vregs) ----
    skill_iota = jax.lax.broadcasted_iota(jnp.int32, (N, S_pad), 1)
    onehot = (idx_ref[...] == skill_iota).astype(jnp.bfloat16)   # [N, 128]
    x = jnp.dot(onehot, emb_ref[...],
                preferred_element_type=jnp.float32)              # [N, H] f32

    A = a_ref[...]                                               # [N, N] bf16 edge counts
    inv_deg = invdeg_ref[...]                                    # [N, 1] f32 (exact, built O(E))

    def sage_prelu(h_f32, wl_ref, wr_ref, b_ref, alpha):
        h_bf = h_f32.astype(jnp.bfloat16)                        # cast once, reuse twice
        # mean over in-neighbors = (A @ h) * 1/deg
        aggr = jnp.dot(A, h_bf, preferred_element_type=jnp.float32) * inv_deg
        # SAGEConv: lin_l(aggr) + lin_r(x)  (two small dots; no sub-vreg concat)
        z = (jnp.dot(aggr.astype(jnp.bfloat16), wl_ref[...],
                     preferred_element_type=jnp.float32)
             + jnp.dot(h_bf, wr_ref[...],
                       preferred_element_type=jnp.float32)
             + b_ref[...])                                       # f32 elementwise
        return jnp.where(z > 0, z, alpha * z)                    # PReLU (f32 VPU)

    h1 = sage_prelu(x, w1l_ref, w1r_ref, b1_ref, al1_ref[0])
    # Dropout(p=0.3): identity in eval mode.
    # TODO(synk): training-mode dropout needs pltpu.prng_seed + prng_random_bits.
    h2 = sage_prelu(h1, w2l_ref, w2r_ref, b2_ref, al2_ref[0])

    # ---- output Linear, lane-dense [N, 128] store (wrapper slices back to H) ----
    o_ref[...] = (jnp.dot(h2.astype(jnp.bfloat16), wo_ref[...],
                          preferred_element_type=jnp.float32) + bo_ref[...])


def init_params(key, num_skills, hidden_dim, *, skills_pad=128, out_pad=128):
    ks = jax.random.split(key, 8)
    bound = 1.0 / jnp.sqrt(hidden_dim)
    uni = lambda k, shape: jax.random.uniform(k, shape, jnp.float32, -bound, bound)

    # Embedding table, zero-padded along the skill axis to 128 rows (bf16 MXU operand).
    emb = jax.random.normal(ks[0], (num_skills, hidden_dim), jnp.float32)
    emb = jnp.pad(emb, ((0, skills_pad - num_skills), (0, 0))).astype(jnp.bfloat16)

    # Output Linear, pre-transposed (y = x @ w_out) and zero-padded to 128 output lanes.
    w_out = jnp.pad(uni(ks[5], (hidden_dim, hidden_dim)),
                    ((0, 0), (0, out_pad - hidden_dim))).astype(jnp.bfloat16)
    b_out = jnp.pad(uni(ks[6], (1, hidden_dim)),
                    ((0, 0), (0, out_pad - hidden_dim)))          # f32

    return {
        "emb":    emb,
        # SAGEConv weights kept separate (lin_l for aggregated neighbors, lin_r
        # for root features), pre-transposed + pre-cast to bf16.
        "w1_l":   uni(ks[1], (hidden_dim, hidden_dim)).astype(jnp.bfloat16),
        "w1_r":   uni(ks[2], (hidden_dim, hidden_dim)).astype(jnp.bfloat16),
        "b1":     jnp.zeros((1, hidden_dim), jnp.float32),
        "alpha1": jnp.full((1,), 0.25, jnp.float32),              # PyTorch PReLU default
        "w2_l":   uni(ks[3], (hidden_dim, hidden_dim)).astype(jnp.bfloat16),
        "w2_r":   uni(ks[4], (hidden_dim, hidden_dim)).astype(jnp.bfloat16),
        "b2":     jnp.zeros((1, hidden_dim), jnp.float32),
        "alpha2": jnp.full((1,), 0.25, jnp.float32),
        "w_out":  w_out,
        "b_out":  b_out,
    }


@jax.jit
def gcn_forward(x_idx, edge_index, edge_weight, params):
    # edge_weight accepted but unused (reference forward never passes it to SAGEConv).
    del edge_weight
    N = x_idx.shape[0]
    H = params["w1_l"].shape[0]
    H_pad = params["w_out"].shape[1]

    src, dst = edge_index[0], edge_index[1]
    # Unnormalized edge-count adjacency, scattered directly into bf16 (exact for
    # counts <= 256). Only O(E) work stays in the wrapper.
    A = jnp.zeros((N, N), jnp.bfloat16).at[dst, src].add(1.0)
    # Exact f32 inverse in-degree, O(E) bincount (no in-kernel XLU reduce).
    deg = jnp.zeros((N,), jnp.float32).at[dst].add(1.0)
    inv_deg = (1.0 / jnp.maximum(deg, 1.0)).reshape(N, 1)

    vmem = pl.BlockSpec(memory_space=pltpu.MemorySpace.VMEM)
    smem = pl.BlockSpec(memory_space=pltpu.MemorySpace.SMEM)

    out_full = pl.pallas_call(
        gcn_kernel,
        out_shape=jax.ShapeDtypeStruct((N, H_pad), jnp.float32),   # lane-dense store
        in_specs=[
            vmem,                       # x_idx   [N, 1]   int32
            vmem,                       # emb     [128, H] bf16
            vmem,                       # A       [N, N]   bf16
            vmem,                       # inv_deg [N, 1]   f32
            vmem, vmem, vmem, smem,     # w1_l, w1_r, b1, alpha1
            vmem, vmem, vmem, smem,     # w2_l, w2_r, b2, alpha2
            vmem, vmem,                 # w_out [H,128] bf16, b_out [1,128] f32
        ],
        out_specs=vmem,
    )(
        x_idx.reshape(N, 1).astype(jnp.int32), params["emb"], A, inv_deg,
        params["w1_l"], params["w1_r"], params["b1"], params["alpha1"],
        params["w2_l"], params["w2_r"], params["b2"], params["alpha2"],
        params["w_out"], params["b_out"],
    )
    return out_full[:, :H]


if __name__ == "__main__":
    num_skills = 100
    hidden_dim = 32
    n_nodes = 64
    n_edges = 256

    key = jax.random.PRNGKey(0)
    k_param, k_x, k_src, k_dst, k_w = jax.random.split(key, 5)

    params = init_params(k_param, num_skills, hidden_dim)

    x_idx = jax.random.randint(k_x, (n_nodes,), 0, num_skills, jnp.int32)
    edge_index = jnp.stack([
        jax.random.randint(k_src, (n_edges,), 0, n_nodes, jnp.int32),
        jax.random.randint(k_dst, (n_edges,), 0, n_nodes, jnp.int32),
    ])                                              # [2, E]
    edge_weight = jax.random.uniform(k_w, (n_edges,), jnp.float32)

    out = gcn_forward(x_idx, edge_index, edge_weight, params)
    jax.block_until_ready(out)
    assert out.shape == (n_nodes, hidden_dim) and out.dtype == jnp.float32
    print("KERNEL_OK")
</pallas_src>

<mosaic_0001>
module attributes {stable_mosaic.version = 11 : i64} {
  func.func @gcn_kernel(%arg0: memref<64x1xi32, #tpu.memory_space<vmem>>, %arg1: memref<128x32xbf16, #tpu.memory_space<vmem>>, %arg2: memref<64x64xbf16, #tpu.memory_space<vmem>>, %arg3: memref<64x1xf32, #tpu.memory_space<vmem>>, %arg4: memref<32x32xbf16, #tpu.memory_space<vmem>>, %arg5: memref<32x32xbf16, #tpu.memory_space<vmem>>, %arg6: memref<1x32xf32, #tpu.memory_space<vmem>>, %arg7: memref<1xf32, #tpu.memory_space<smem>>, %arg8: memref<32x32xbf16, #tpu.memory_space<vmem>>, %arg9: memref<32x32xbf16, #tpu.memory_space<vmem>>, %arg10: memref<1x32xf32, #tpu.memory_space<vmem>>, %arg11: memref<1xf32, #tpu.memory_space<smem>>, %arg12: memref<32x128xbf16, #tpu.memory_space<vmem>>, %arg13: memref<1x128xf32, #tpu.memory_space<vmem>>, %arg14: memref<64x128xf32, #tpu.memory_space<vmem>>) attributes {dimension_semantics = [], scalar_prefetch = 0 : i64, scratch_operands = 0 : i64, tpu.core_type = #tpu.core_type<tc>} {
    %0 = tpu.iota {dimensions = array<i32: 1>} : vector<64x128xi32>
    %c0 = arith.constant 0 : index
    %c0_0 = arith.constant 0 : index
    %1 = vector.load %arg0[%c0, %c0_0] : memref<64x1xi32, #tpu.memory_space<vmem>>, vector<64x1xi32>
    %2 = vector.broadcast %1 : vector<64x1xi32> to vector<64x128xi32>
    %3 = arith.cmpi eq, %2, %0 : vector<64x128xi32>
    %4 = arith.extui %3 : vector<64x128xi1> to vector<64x128xi32>
    %5 = arith.sitofp %4 : vector<64x128xi32> to vector<64x128xf32>
    %6 = arith.truncf %5 : vector<64x128xf32> to vector<64x128xbf16>
    %c0_1 = arith.constant 0 : index
    %c0_2 = arith.constant 0 : index
    %7 = vector.load %arg1[%c0_1, %c0_2] : memref<128x32xbf16, #tpu.memory_space<vmem>>, vector<128x32xbf16>
    %cst = arith.constant dense<0.000000e+00> : vector<64x32xf32>
    %8 = tpu.matmul %6, %7, %cst {dimension_numbers = #tpu.dot_dimension_numbers<[1], [0], [0], [1], [0, 0, 1, 1], [], []>} : vector<64x128xbf16>, vector<128x32xbf16>, vector<64x32xf32> -> vector<64x32xf32>
    %c0_3 = arith.constant 0 : index
    %c0_4 = arith.constant 0 : index
    %9 = vector.load %arg2[%c0_3, %c0_4] : memref<64x64xbf16, #tpu.memory_space<vmem>>, vector<64x64xbf16>
    %c0_5 = arith.constant 0 : index
    %c0_6 = arith.constant 0 : index
    %10 = vector.load %arg3[%c0_5, %c0_6] : memref<64x1xf32, #tpu.memory_space<vmem>>, vector<64x1xf32>
    %c0_7 = arith.constant 0 : index
    %11 = memref.load %arg7[%c0_7] : memref<1xf32, #tpu.memory_space<smem>>
    %12 = arith.truncf %8 : vector<64x32xf32> to vector<64x32xbf16>
    %cst_8 = arith.constant dense<0.000000e+00> : vector<64x32xf32>
    %13 = tpu.matmul %9, %12, %cst_8 {dimension_numbers = #tpu.dot_dimension_numbers<[1], [0], [0], [1], [0, 0, 1, 1], [], []>} : vector<64x64xbf16>, vector<64x32xbf16>, vector<64x32xf32> -> vector<64x32xf32>
    %14 = vector.broadcast %10 : vector<64x1xf32> to vector<64x32xf32>
    %15 = arith.mulf %13, %14 : vector<64x32xf32>
    %16 = arith.truncf %15 : vector<64x32xf32> to vector<64x32xbf16>
    %c0_9 = arith.constant 0 : index
    %c0_10 = arith.constant 0 : index
    %17 = vector.load %arg4[%c0_9, %c0_10] : memref<32x32xbf16, #tpu.memory_space<vmem>>, vector<32x32xbf16>
    %cst_11 = arith.constant dense<0.000000e+00> : vector<64x32xf32>
    %18 = tpu.matmul %16, %17, %cst_11 {dimension_numbers = #tpu.dot_dimension_numbers<[1], [0], [0], [1], [0, 0, 1, 1], [], []>} : vector<64x32xbf16>, vector<32x32xbf16>, vector<64x32xf32> -> vector<64x32xf32>
    %c0_12 = arith.constant 0 : index
    %c0_13 = arith.constant 0 : index
    %19 = vector.load %arg5[%c0_12, %c0_13] : memref<32x32xbf16, #tpu.memory_space<vmem>>, vector<32x32xbf16>
    %cst_14 = arith.constant dense<0.000000e+00> : vector<64x32xf32>
    %20 = tpu.matmul %12, %19, %cst_14 {dimension_numbers = #tpu.dot_dimension_numbers<[1], [0], [0], [1], [0, 0, 1, 1], [], []>} : vector<64x32xbf16>, vector<32x32xbf16>, vector<64x32xf32> -> vector<64x32xf32>
    %21 = arith.addf %18, %20 : vector<64x32xf32>
    %c0_15 = arith.constant 0 : index
    %c0_16 = arith.constant 0 : index
    %22 = vector.load %arg6[%c0_15, %c0_16] : memref<1x32xf32, #tpu.memory_space<vmem>>, vector<1x32xf32>
    %23 = vector.broadcast %22 : vector<1x32xf32> to vector<64x32xf32>
    %24 = arith.addf %21, %23 : vector<64x32xf32>
    %cst_17 = arith.constant 0.000000e+00 : f32
    %25 = vector.broadcast %cst_17 : f32 to vector<64x32xf32>
    %26 = arith.cmpf ogt, %24, %25 : vector<64x32xf32>
    %27 = vector.broadcast %11 : f32 to vector<64x32xf32>
    %28 = arith.mulf %27, %24 : vector<64x32xf32>
    %29 = arith.select %26, %24, %28 : vector<64x32xi1>, vector<64x32xf32>
    %c0_18 = arith.constant 0 : index
    %30 = memref.load %arg11[%c0_18] : memref<1xf32, #tpu.memory_space<smem>>
    %31 = arith.truncf %29 : vector<64x32xf32> to vector<64x32xbf16>
    %cst_19 = arith.constant dense<0.000000e+00> : vector<64x32xf32>
    %32 = tpu.matmul %9, %31, %cst_19 {dimension_numbers = #tpu.dot_dimension_numbers<[1], [0], [0], [1], [0, 0, 1, 1], [], []>} : vector<64x64xbf16>, vector<64x32xbf16>, vector<64x32xf32> -> vector<64x32xf32>
    %33 = vector.broadcast %10 : vector<64x1xf32> to vector<64x32xf32>
    %34 = arith.mulf %32, %33 : vector<64x32xf32>
    %35 = arith.truncf %34 : vector<64x32xf32> to vector<64x32xbf16>
    %c0_20 = arith.constant 0 : index
    %c0_21 = arith.constant 0 : index
    %36 = vector.load %arg8[%c0_20, %c0_21] : memref<32x32xbf16, #tpu.memory_space<vmem>>, vector<32x32xbf16>
    %cst_22 = arith.constant dense<0.000000e+00> : vector<64x32xf32>
    %37 = tpu.matmul %35, %36, %cst_22 {dimension_numbers = #tpu.dot_dimension_numbers<[1], [0], [0], [1], [0, 0, 1, 1], [], []>} : vector<64x32xbf16>, vector<32x32xbf16>, vector<64x32xf32> -> vector<64x32xf32>
    %c0_23 = arith.constant 0 : index
    %c0_24 = arith.constant 0 : index
    %38 = vector.load %arg9[%c0_23, %c0_24] : memref<32x32xbf16, #tpu.memory_space<vmem>>, vector<32x32xbf16>
    %cst_25 = arith.constant dense<0.000000e+00> : vector<64x32xf32>
    %39 = tpu.matmul %31, %38, %cst_25 {dimension_numbers = #tpu.dot_dimension_numbers<[1], [0], [0], [1], [0, 0, 1, 1], [], []>} : vector<64x32xbf16>, vector<32x32xbf16>, vector<64x32xf32> -> vector<64x32xf32>
    %40 = arith.addf %37, %39 : vector<64x32xf32>
    %c0_26 = arith.constant 0 : index
    %c0_27 = arith.constant 0 : index
    %41 = vector.load %arg10[%c0_26, %c0_27] : memref<1x32xf32, #tpu.memory_space<vmem>>, vector<1x32xf32>
    %42 = vector.broadcast %41 : vector<1x32xf32> to vector<64x32xf32>
    %43 = arith.addf %40, %42 : vector<64x32xf32>
    %cst_28 = arith.constant 0.000000e+00 : f32
    %44 = vector.broadcast %cst_28 : f32 to vector<64x32xf32>
    %45 = arith.cmpf ogt, %43, %44 : vector<64x32xf32>
    %46 = vector.broadcast %30 : f32 to vector<64x32xf32>
    %47 = arith.mulf %46, %43 : vector<64x32xf32>
    %48 = arith.select %45, %43, %47 : vector<64x32xi1>, vector<64x32xf32>
    %49 = arith.truncf %48 : vector<64x32xf32> to vector<64x32xbf16>
    %c0_29 = arith.constant 0 : index
    %c0_30 = arith.constant 0 : index
    %50 = vector.load %arg12[%c0_29, %c0_30] : memref<32x128xbf16, #tpu.memory_space<vmem>>, vector<32x128xbf16>
    %cst_31 = arith.constant dense<0.000000e+00> : vector<64x128xf32>
    %51 = tpu.matmul %49, %50, %cst_31 {dimension_numbers = #tpu.dot_dimension_numbers<[1], [0], [0], [1], [0, 0, 1, 1], [], []>} : vector<64x32xbf16>, vector<32x128xbf16>, vector<64x128xf32> -> vector<64x128xf32>
    %c0_32 = arith.constant 0 : index
    %c0_33 = arith.constant 0 : index
    %52 = vector.load %arg13[%c0_32, %c0_33] : memref<1x128xf32, #tpu.memory_space<vmem>>, vector<1x128xf32>
    %53 = vector.broadcast %52 : vector<1x128xf32> to vector<64x128xf32>
    %54 = arith.addf %51, %53 : vector<64x128xf32>
    %c0_34 = arith.constant 0 : index
    %c0_35 = arith.constant 0 : index
    %55 = vector.load %arg14[%c0_34, %c0_35] : memref<64x128xf32, #tpu.memory_space<vmem>>, vector<64x128xf32>
    tpu.vector_store %arg14[%c0_34, %c0_35], %54 {strides = array<i32>} : memref<64x128xf32, #tpu.memory_space<vmem>>, vector<64x128xf32>,
    return
  }
}

</mosaic_0001>

<bundles_post_ra>
// kernel: gcn_forward.1
= control target key start
LH: loop header
LB: loop body
LE: loop exit
PB: predicated region body
PF: predicated region fallthrough
CT: control target
= control target key end

     0   :  { %v930_v0 = vmov 0   ;;  %v50_v26 = vlaneseq  ;;  %v931_v29 = vmov 1.0|1.0   ;;  %vm360_vm12 = vcmask 261120   ;;  %s1236_s0 = inlined_call_operand.vmem [shape: s32[64,1], index: 0, kind: input, shape index: {}]   ;;  %s1237_s1 = inlined_call_operand.vmem [shape: bf16[128,32], index: 1, kind: input, shape index: {}]   ;;  %s1238_s3 = inlined_call_operand.vmem [shape: f32[64,1], index: 3, kind: input, shape index: {}]   ;;  %s1239_s5 = inlined_call_operand.vmem [shape: bf16[32,32], index: 5, kind: input, shape index: {}]   ;;  %s1240_s2 = inlined_call_operand.vmem [shape: bf16[64,64], index: 2, kind: input, shape index: {}]   ;;  %s1241_s6 = inlined_call_operand.vmem [shape: f32[1,32], index: 6, kind: input, shape index: {}]   ;;  %s1242_s4 = inlined_call_operand.vmem [shape: bf16[32,32], index: 4, kind: input, shape index: {}]   ;;  %s1243_s9 = inlined_call_operand.vmem [shape: bf16[32,32], index: 9, kind: input, shape index: {}]   ;;  %s1244_s7 = inlined_call_operand.<no memory space> [shape: f32[1], index: 7, kind: input, shape index: {}]   ;;  %s1245_s10 = inlined_call_operand.vmem [shape: f32[1,32], index: 10, kind: input, shape index: {}]   ;;  %s1246_s8 = inlined_call_operand.vmem [shape: bf16[32,32], index: 8, kind: input, shape index: {}]   ;;  %s1247_s13 = inlined_call_operand.vmem [shape: f32[1,128], index: 13, kind: input, shape index: {}]   ;;  %s1248_s12 = inlined_call_operand.vmem [shape: bf16[32,128], index: 12, kind: input, shape index: {}]   ;;  %s1249_s11 = inlined_call_operand.<no memory space> [shape: f32[1], index: 11, kind: input, shape index: {}]   ;;  %s1250_s14 = inlined_call_operand.vmem [shape: f32[64,128], index: 14, kind: output, shape index: {}]  }
   0x1   :  { %925 = vset.pattern.permute.xlu1 %v930_v0  ;;  %924 = vset.pattern.permute.xlu0 %v930_v0  ;;  %v54_v1 = vld [vmem:[%s1236_s0 + $0x10] sm:$0xff]  ;;  %v52_v2 = vld [vmem:[%s1236_s0] sm:$0xff]  ;;  %v55_v4 = vld [vmem:[%s1236_s0 + $0x18] sm:$0xff]  ;;  %vm246_vm13 = vcmask 523264  }
   0x2   :  { %67 = vperm.xlu1 %925, %v54_v1   ;;  %61 = vperm.xlu0 %924, %v52_v2   ;;  %v56_v3 = vld [vmem:[%s1236_s0 + $0x20] sm:$0xff]  ;;  %v53_v5 = vld [vmem:[%s1236_s0 + $0x8] sm:$0xff]  ;;  %v905_v7 = vld [vmem:[%s1237_s1 + $0x38] sm:$0xff]  ;;  %v51_v27 = vand.u32 127, %v50_v26 }
   0x3   :  { %926 = vset.pattern.permute.xlu2 %v930_v0  ;;  %v57_v6 = vld [vmem:[%s1236_s0 + $0x28] sm:$0xff]  ;;  %176 = vmatpush.bf16.msra.mxu0 %v905_v7  ;;  %v904_v8 = vld [vmem:[%s1237_s1 + $0x30] sm:$0xff]  ;;  %v59_v9 = vld [vmem:[%s1236_s0 + $0x38] sm:$0xff] }
   0x4   :  { %73 = vperm.xlu2 %926, %v56_v3   ;;  %v58_v10 = vld [vmem:[%s1236_s0 + $0x30] sm:$0xff]  ;;  %v903_v11 = vld [vmem:[%s1237_s1 + $0x28] sm:$0xff]  ;;  %v213_v12 = vld [vmem:[%s1238_s3] sm:$0xff] }
   0x5   :  { %v902_v13 = vld [vmem:[%s1237_s1 + $0x20] sm:$0xff]  ;;  %v215_v14 = vld [vmem:[%s1238_s3 + $0x10] sm:$0xff]  ;;  %v214_v15 = vld [vmem:[%s1238_s3 + $0x8] sm:$0xff] }
   0x6   :  { %v901_v16 = vld [vmem:[%s1237_s1 + $0x18] sm:$0xff]  ;;  %v900_v18 = vld [vmem:[%s1237_s1 + $0x10] sm:$0xff]  ;;  %v218_v19 = vld [vmem:[%s1238_s3 + $0x28] sm:$0xff] }
   0x7   :  { %177 = vmatpush.bf16.msra.mxu0 %v904_v8  ;;  %v216_v17 = vld [vmem:[%s1238_s3 + $0x18] sm:$0xff]  ;;  %v217_v20 = vld [vmem:[%s1238_s3 + $0x20] sm:$0xff]  ;;  %v219_v21 = vld [vmem:[%s1238_s3 + $0x30] sm:$0xff] }
   0x8   :  { %v220_v22 = vld [vmem:[%s1238_s3 + $0x38] sm:$0xff]  ;;  %v899_v23 = vld [vmem:[%s1237_s1 + $0x8] sm:$0xff]  ;;  %v898_v24 = vld [vmem:[%s1237_s1] sm:$0xff] }
   0x9   :  { %v913_v36 = vld [vmem:[%s1239_s5 + $0x8] sm:$0xff]  ;;  %v912_v37 = vld [vmem:[%s1239_s5] sm:$0xff]  ;;  %v1106_v52 = vld [vmem:[%s1240_s2 + $0x10] sm:$0xff] }
   0xa   :  { %70 = vperm.xlu1 %925, %v55_v4   ;;  %64 = vperm.xlu0 %924, %v53_v5   ;;  %v1092_v50 = vld [vmem:[%s1240_s2] sm:$0xff]  ;;  %v1099_v51 = vld [vmem:[%s1240_s2 + $0x8] sm:$0xff]  ;;  %v1113_v53 = vld [vmem:[%s1240_s2 + $0x18] sm:$0xff] }
   0xb   :  { %178 = vmatpush.bf16.msra.mxu0 %v903_v11  ;;  %379 = vmatpush.bf16.msra.mxu2 %v913_v36  ;;  %v911_v54 = vld [vmem:[%s1242_s4 + $0x8] sm:$0xff]  ;;  %v910_v55 = vld [vmem:[%s1242_s4] sm:$0xff] }
   0xc   :  { %76 = vperm.xlu2 %926, %v57_v6   ;;  %432 = vmatpush.bf16.msra.mxu3 %v911_v54  ;;  %v927_v26 = vld [vmem:[%s1241_s6] ss:$0 sm:$0xff] }
   0xf   :  { %179 = vmatpush.bf16.msra.mxu0 %v902_v13  ;;  %380 = vmatpush.bf16.msra.mxu2 %v912_v37 }
  0x10   :  { %433 = vmatpush.bf16.msra.mxu3 %v910_v55 }
  0x12   :  { %82 = vperm.xlu1 %925, %v59_v9   ;;  %79 = vperm.xlu0 %924, %v58_v10  }
  0x13   :  { %180 = vmatpush.bf16.msra.mxu0 %v901_v16 }
  0x14   :  { %290 = vperm.xlu2 %926, %v213_v12  }
  0x17   :  { %181 = vmatpush.bf16.msra.mxu0 %v900_v18 }
  0x1a   :  { %300 = vperm.xlu1 %925, %v215_v14   ;;  %295 = vperm.xlu0 %924, %v214_v15  }
  0x1b   :  { %182 = vmatpush.bf16.msra.mxu0 %v899_v23 }
  0x1c   :  { %305 = vperm.xlu2 %926, %v216_v17  }
  0x1f   :  { %183 = vmatpush.bf16.msra.mxu0 %v898_v24 }
  0x22   :  { %315 = vperm.xlu1 %925, %v218_v19   ;;  %310 = vperm.xlu0 %924, %v217_v20   ;;  %v917_v20 = vld [vmem:[%s1243_s9 + $0x8] sm:$0xff] }
  0x23   :  { %576 = vmatpush.bf16.msrb.mxu3 %v917_v20 }
  0x24   :  { %320 = vperm.xlu2 %926, %v219_v21   ;;  %v916_v21 = vld [vmem:[%s1243_s9] sm:$0xff] }
  0x27   :  { %577 = vmatpush.bf16.msrb.mxu3 %v916_v21 }
  0x2a   :  { %325 = vperm.xlu0 %924, %v220_v22  }
  0x5e   :  { %v74_v32 = vpop.permute.xlu2 %73 }
  0x5f   :  { %vm88_vm6 = vcmp.eq.s32.totalorder %v74_v32, %v51_v27 }
  0x66   :  { %v77_v33 = vpop.permute.xlu2 %76 }
  0x67   :  { %vm89_vm7 = vcmp.eq.s32.totalorder %v77_v33, %v51_v27 }
  0x68   :  { %vm810_vm8 = vmpackc.low %vm89_vm7, %vm88_vm6 }
  0x6e   :  { %v1123_v57 = vpop.permute.xlu2 %290 }
  0x74   :  { %v62_v25 = vpop.permute.xlu0 %61  ;;  %v68_v30 = vpop.permute.xlu1 %67 }
  0x75   :  { %vm84_vm1 = vcmp.eq.s32.totalorder %v62_v25, %v51_v27  ;;  %vm86_vm3 = vcmp.eq.s32.totalorder %v68_v30, %v51_v27 }
  0x76   :  { %v1130_v0 = vpop.permute.xlu2 %305 }
  0x7c   :  { %v65_v28 = vpop.permute.xlu0 %64  ;;  %v71_v31 = vpop.permute.xlu1 %70 }
  0x7d   :  { %vm85_vm0 = vcmp.eq.s32.totalorder %v65_v28, %v51_v27  ;;  %vm87_vm4 = vcmp.eq.s32.totalorder %v71_v31, %v51_v27 }
  0x7e   :  { %vm806_vm2 = vmpackc.low %vm85_vm0, %vm84_vm1  ;;  %v1144_v14 = vpop.permute.xlu2 %320 }
  0x7f   :  { %807 = vmatmul.msk.bf16.vlgmr.msra.gmra.mxu0 %vm806_vm2, %v931_v29  ;;  %vm808_vm5 = vmpackc.low %vm87_vm4, %vm86_vm3 }
  0x84   :  { %v83_v34 = vpop.permute.xlu1 %82  ;;  %v80_v35 = vpop.permute.xlu0 %79 }
  0x85   :  { %vm91_vm9 = vcmp.eq.s32.totalorder %v83_v34, %v51_v27  ;;  %vm90_vm10 = vcmp.eq.s32.totalorder %v80_v35, %v51_v27 }
  0x86   :  { %vm812_vm11 = vmpackc.low %vm91_vm9, %vm90_vm10 }
  0x8c   :  { %v1125_v58 = vpop.permute.xlu0 %295  ;;  %v1132_v1 = vpop.permute.xlu1 %300 }
  0x8f   :  { %809 = vmatmul.msk.bf16.gmra.mxu0 %vm808_vm5, %v931_v29 }
  0x94   :  { %v1137_v7 = vpop.permute.xlu1 %315  ;;  %v1139_v8 = vpop.permute.xlu0 %310 }
  0x9c   :  { %v1146_v15 = vpop.permute.xlu0 %325 }
  0x9f   :  { %811 = vmatmul.msk.bf16.gmra.mxu0 %vm810_vm8, %v931_v29 }
  0xaf   :  { %813 = vmatmul.msk.bf16.gmra.mxu0 %vm812_vm11, %v931_v29  ;;  %v475_v29 = vstv %s1244_s7 }
  0xfc   :  { %v185_v38 = vpop.f32.mrf.mxu0 }
 0x104   :  { %v187_v39 = vpop.f32.mrf.mxu0 }
 0x105   :  { %v222_v40 = vpack.c.bf16 %v187_v39, %v185_v38 }
 0x107   :  { %842 = vmatmul.msk.bf16.vlgmr.msra.gmra.mxu2 %vm360_vm12, %v222_v40 }
 0x10c   :  { %v190_v41 = vpop.f32.mrf.mxu0 }
 0x114   :  { %v192_v42 = vpop.f32.mrf.mxu0 }
 0x115   :  { %v223_v43 = vpack.c.bf16 %v192_v42, %v190_v41 }
 0x117   :  { %843 = vmatmul.msk.bf16.gmra.mxu2 %vm360_vm12, %v223_v43 }
 0x11c   :  { %v195_v44 = vpop.f32.mrf.mxu0 }
 0x124   :  { %v197_v45 = vpop.f32.mrf.mxu0 }
 0x125   :  { %v224_v46 = vpack.c.bf16 %v197_v45, %v195_v44 }
 0x127   :  { %844 = vmatmul.msk.bf16.gmra.mxu2 %vm360_vm12, %v224_v46 }
 0x12c   :  { %v200_v47 = vpop.f32.mrf.mxu0 }
 0x134   :  { %v202_v48 = vpop.f32.mrf.mxu0 }
 0x135   :  { %v225_v49 = vpack.c.bf16 %v202_v48, %v200_v47 }
 0x137   :  { %263 = vmatpush.bf16.msra.mxu1 %v225_v49  ;;  %845 = vmatmul.msk.bf16.gmra.mxu2 %vm360_vm12, %v225_v49 }
 0x13b   :  { %264 = vmatpush.bf16.msra.mxu1 %v224_v46 }
 0x13f   :  { %265 = vmatpush.bf16.msra.mxu1 %v223_v43 }
 0x143   :  { %266 = vmatpush.bf16.msra.mxu1 %v222_v40 }
 0x146   :  { %830 = vmatmul.msk.bf16.vlgmr.msra.gmra.mxu1 %vm246_vm13, %v1092_v50 }
 0x156   :  { %831 = vmatmul.msk.bf16.gmra.mxu1 %vm246_vm13, %v1099_v51 }
 0x166   :  { %832 = vmatmul.msk.bf16.gmra.mxu1 %vm246_vm13, %v1106_v52 }
 0x176   :  { %833 = vmatmul.msk.bf16.gmra.mxu1 %vm246_vm13, %v1113_v53 }
 0x18a   :  { %v382_v22 = vpop.f32.mrf.mxu2 }
 0x192   :  { %v384_v23 = vpop.f32.mrf.mxu2 }
 0x19a   :  { %v387_v27 = vpop.f32.mrf.mxu2 }
 0x1a2   :  { %v389_v37 = vpop.f32.mrf.mxu2 }
 0x1aa   :  { %v392_v44 = vpop.f32.mrf.mxu2 }
 0x1c3   :  { %v268_v56 = vpop.f32.mrf.mxu1 }
 0x1c4   :  { %v328_v60 = vmul.f32 %v1123_v57, %v268_v56 }
 0x1cb   :  { %v270_v59 = vpop.f32.mrf.mxu1 }
 0x1cc   :  { %v329_v61 = vmul.f32 %v1125_v58, %v270_v59  ;;  %v394_v59 = vpop.f32.mrf.mxu2 }
 0x1ce   :  { %v336_v62 = vpack.c.bf16 %v329_v61, %v328_v60 }
 0x1d0   :  { %854 = vmatmul.msk.bf16.vlgmr.msra.gmra.mxu3 %vm360_vm12, %v336_v62 }
 0x1d3   :  { %v273_v63 = vpop.f32.mrf.mxu1 }
 0x1d4   :  { %v330_v3 = vmul.f32 %v1132_v1, %v273_v63 }
 0x1db   :  { %v275_v2 = vpop.f32.mrf.mxu1 }
 0x1dc   :  { %v331_v4 = vmul.f32 %v1130_v0, %v275_v2 }
 0x1de   :  { %v337_v5 = vpack.c.bf16 %v331_v4, %v330_v3  ;;  %v397_v4 = vpop.f32.mrf.mxu2 }
 0x1e0   :  { %855 = vmatmul.msk.bf16.gmra.mxu3 %vm360_vm12, %v337_v5 }
 0x1e3   :  { %v278_v6 = vpop.f32.mrf.mxu1 }
 0x1e4   :  { %v332_v10 = vmul.f32 %v1139_v8, %v278_v6 }
 0x1eb   :  { %v280_v9 = vpop.f32.mrf.mxu1 }
 0x1ec   :  { %v333_v11 = vmul.f32 %v1137_v7, %v280_v9 }
 0x1ee   :  { %v338_v12 = vpack.c.bf16 %v333_v11, %v332_v10 }
 0x1f0   :  { %856 = vmatmul.msk.bf16.gmra.mxu3 %vm360_vm12, %v338_v12 }
 0x1f3   :  { %v283_v13 = vpop.f32.mrf.mxu1 }
 0x1f4   :  { %v334_v17 = vmul.f32 %v1144_v14, %v283_v13  ;;  %v399_v13 = vpop.f32.mrf.mxu2 }
 0x1fb   :  { %v285_v16 = vpop.f32.mrf.mxu1 }
 0x1fc   :  { %v335_v18 = vmul.f32 %v1146_v15, %v285_v16 }
 0x1fe   :  { %v339_v19 = vpack.c.bf16 %v335_v18, %v334_v17 }
 0x200   :  { %857 = vmatmul.msk.bf16.gmra.mxu3 %vm360_vm12, %v339_v19 }
 0x253   :  { %v435_v24 = vpop.f32.mrf.mxu3 }
 0x254   :  { %v436_v25 = vadd.f32 %v435_v24, %v382_v22  ;;  %v915_v24 = vld [vmem:[%s1246_s8 + $0x8] sm:$0xff] }
 0x255   :  { %629 = vmatpush.bf16.msrb.mxu1 %v915_v24 }
 0x256   :  { %v459_v28 = vadd.f32 %v927_v26, %v436_v25  ;;  %v914_v25 = vld [vmem:[%s1246_s8] sm:$0xff] }
 0x258   :  { %v476_v32 = vmul.f32 %v475_v29, %v459_v28  ;;  %vm467_vm14 = vcmp.gt.f32.partialorder %v459_v28, 0.0 }
 0x259   :  { %630 = vmatpush.bf16.msrb.mxu1 %v914_v25 }
 0x25a   :  { %v484_v35 = vsel %vm467_vm14, %v459_v28, %v476_v32 }
 0x25b   :  { %v437_v30 = vpop.f32.mrf.mxu3 }
 0x25c   :  { %v438_v31 = vadd.f32 %v437_v30, %v384_v23 }
 0x25e   :  { %v460_v33 = vadd.f32 %v927_v26, %v438_v31 }
 0x260   :  { %vm468_vm15 = vcmp.gt.f32.partialorder %v460_v33, 0.0  ;;  %v477_v34 = vmul.f32 %v475_v29, %v460_v33 }
 0x262   :  { %v485_v36 = vsel %vm468_vm15, %v460_v33, %v477_v34 }
 0x263   :  { %v440_v38 = vpop.f32.mrf.mxu3  ;;  %v493_v39 = vpack.c.bf16 %v485_v36, %v484_v35 }
 0x264   :  { %v441_v40 = vadd.f32 %v440_v38, %v387_v27 }
 0x265   :  { %870 = vmatmul.msk.bf16.vlgmr.msrb.gmra.mxu3 %vm360_vm12, %v493_v39 }
 0x266   :  { %v461_v41 = vadd.f32 %v927_v26, %v441_v40 }
 0x268   :  { %v478_v45 = vmul.f32 %v475_v29, %v461_v41  ;;  %vm469_vm0 = vcmp.gt.f32.partialorder %v461_v41, 0.0 }
 0x26a   :  { %v486_v48 = vsel %vm469_vm0, %v461_v41, %v478_v45 }
 0x26b   :  { %v442_v42 = vpop.f32.mrf.mxu3 }
 0x26c   :  { %v443_v43 = vadd.f32 %v442_v42, %v389_v37 }
 0x26e   :  { %v462_v46 = vadd.f32 %v927_v26, %v443_v43  ;;  %v672_v43 = vstv %s1249_s11 }
 0x270   :  { %vm470_vm1 = vcmp.gt.f32.partialorder %v462_v46, 0.0  ;;  %v479_v47 = vmul.f32 %v475_v29, %v462_v46 }
 0x272   :  { %v487_v49 = vsel %vm470_vm1, %v462_v46, %v479_v47 }
 0x273   :  { %v445_v54 = vpop.f32.mrf.mxu3  ;;  %v494_v55 = vpack.c.bf16 %v487_v49, %v486_v48 }
 0x274   :  { %v446_v56 = vadd.f32 %v445_v54, %v392_v44 }
 0x275   :  { %871 = vmatmul.msk.bf16.gmra.mxu3 %vm360_vm12, %v494_v55 }
 0x276   :  { %v463_v60 = vadd.f32 %v927_v26, %v446_v56 }
 0x278   :  { %v480_v63 = vmul.f32 %v475_v29, %v463_v60  ;;  %vm471_vm2 = vcmp.gt.f32.partialorder %v463_v60, 0.0 }
 0x27a   :  { %v488_v5 = vsel %vm471_vm2, %v463_v60, %v480_v63 }
 0x27b   :  { %v447_v61 = vpop.f32.mrf.mxu3 }
 0x27c   :  { %v448_v62 = vadd.f32 %v447_v61, %v394_v59 }
 0x27e   :  { %v464_v2 = vadd.f32 %v927_v26, %v448_v62 }
 0x280   :  { %vm472_vm3 = vcmp.gt.f32.partialorder %v464_v2, 0.0  ;;  %v481_v3 = vmul.f32 %v475_v29, %v464_v2 }
 0x282   :  { %v489_v6 = vsel %vm472_vm3, %v464_v2, %v481_v3 }
 0x283   :  { %v450_v9 = vpop.f32.mrf.mxu3  ;;  %v495_v10 = vpack.c.bf16 %v489_v6, %v488_v5 }
 0x284   :  { %v451_v11 = vadd.f32 %v450_v9, %v397_v4 }
 0x285   :  { %872 = vmatmul.msk.bf16.gmra.mxu3 %vm360_vm12, %v495_v10 }
 0x286   :  { %v465_v12 = vadd.f32 %v927_v26, %v451_v11 }
 0x288   :  { %v482_v19 = vmul.f32 %v475_v29, %v465_v12  ;;  %vm473_vm4 = vcmp.gt.f32.partialorder %v465_v12, 0.0 }
 0x28a   :  { %v490_v21 = vsel %vm473_vm4, %v465_v12, %v482_v19 }
 0x28b   :  { %v452_v16 = vpop.f32.mrf.mxu3 }
 0x28c   :  { %v453_v17 = vadd.f32 %v452_v16, %v399_v13 }
 0x28e   :  { %v466_v18 = vadd.f32 %v927_v26, %v453_v17 }
 0x290   :  { %vm474_vm5 = vcmp.gt.f32.partialorder %v466_v18, 0.0  ;;  %v483_v20 = vmul.f32 %v475_v29, %v466_v18 }
 0x292   :  { %v491_v22 = vsel %vm474_vm5, %v466_v18, %v483_v20 }
 0x293   :  { %v496_v23 = vpack.c.bf16 %v491_v22, %v490_v21 }
 0x295   :  { %501 = vmatpush.bf16.msrb.mxu2 %v496_v23  ;;  %873 = vmatmul.msk.bf16.gmra.mxu3 %vm360_vm12, %v496_v23 }
 0x299   :  { %502 = vmatpush.bf16.msrb.mxu2 %v495_v10 }
 0x29d   :  { %503 = vmatpush.bf16.msrb.mxu2 %v494_v55 }
 0x2a1   :  { %504 = vmatpush.bf16.msrb.mxu2 %v493_v39 }
 0x2a4   :  { %858 = vmatmul.msk.bf16.vlgmr.msrb.gmra.mxu2 %vm246_vm13, %v1092_v50 }
 0x2b4   :  { %859 = vmatmul.msk.bf16.gmra.mxu2 %vm246_vm13, %v1099_v51 }
 0x2c4   :  { %860 = vmatmul.msk.bf16.gmra.mxu2 %vm246_vm13, %v1106_v52 }
 0x2d4   :  { %861 = vmatmul.msk.bf16.gmra.mxu2 %vm246_vm13, %v1113_v53 }
 0x327   :  { %v506_v50 = vpop.f32.mrf.mxu2 }
 0x328   :  { %v526_v51 = vmul.f32 %v506_v50, %v1123_v57 }
 0x32f   :  { %v508_v26 = vpop.f32.mrf.mxu2 }
 0x330   :  { %v527_v27 = vmul.f32 %v508_v26, %v1125_v58 }
 0x332   :  { %v534_v52 = vpack.c.bf16 %v527_v27, %v526_v51 }
 0x334   :  { %882 = vmatmul.msk.bf16.vlgmr.msrb.gmra.mxu1 %vm360_vm12, %v534_v52 }
 0x337   :  { %v511_v53 = vpop.f32.mrf.mxu2 }
 0x338   :  { %v528_v29 = vmul.f32 %v511_v53, %v1132_v1 }
 0x33f   :  { %v513_v28 = vpop.f32.mrf.mxu2 }
 0x340   :  { %v529_v30 = vmul.f32 %v513_v28, %v1130_v0  ;;  %v919_v0 = vld [vmem:[%s1248_s12 + $0x8] sm:$0xff] }
 0x341   :  { %731 = vmatpush.bf16.msrb.mxu0 %v919_v0  ;;  %920 = vmatpush.bf16.msra.mxu2 %v919_v0 }
 0x342   :  { %v535_v31 = vpack.c.bf16 %v529_v30, %v528_v29 }
 0x344   :  { %883 = vmatmul.msk.bf16.gmra.mxu1 %vm360_vm12, %v535_v31 }
 0x347   :  { %v516_v32 = vpop.f32.mrf.mxu2 }
 0x348   :  { %v530_v34 = vmul.f32 %v516_v32, %v1139_v8  ;;  %v579_v8 = vpop.f32.mrf.mxu3 }
 0x34f   :  { %v518_v33 = vpop.f32.mrf.mxu2 }
 0x350   :  { %v531_v57 = vmul.f32 %v518_v33, %v1137_v7  ;;  %v918_v7 = vld [vmem:[%s1248_s12] sm:$0xff]  ;;  %v581_v39 = vpop.f32.mrf.mxu3 }
 0x351   :  { %732 = vmatpush.bf16.msrb.mxu0 %v918_v7  ;;  %921 = vmatpush.bf16.msra.mxu2 %v918_v7 }
 0x352   :  { %v536_v35 = vpack.c.bf16 %v531_v57, %v530_v34  ;;  %v929_v34 = vld [vmem:[%s1247_s13] ss:$0 sm:$0xff] }
 0x354   :  { %884 = vmatmul.msk.bf16.gmra.mxu1 %vm360_vm12, %v536_v35 }
 0x357   :  { %v521_v58 = vpop.f32.mrf.mxu2 }
 0x358   :  { %v532_v37 = vmul.f32 %v521_v58, %v1144_v14  ;;  %v584_v41 = vpop.f32.mrf.mxu3 }
 0x35f   :  { %v523_v36 = vpop.f32.mrf.mxu2 }
 0x360   :  { %v533_v1 = vmul.f32 %v523_v36, %v1146_v15  ;;  %v928_v15 = vld [vmem:[%s1245_s10] ss:$0 sm:$0xff]  ;;  %v586_v55 = vpop.f32.mrf.mxu3 }
 0x362   :  { %v537_v38 = vpack.c.bf16 %v533_v1, %v532_v37 }
 0x364   :  { %885 = vmatmul.msk.bf16.gmra.mxu1 %vm360_vm12, %v537_v38 }
 0x368   :  { %v589_v2 = vpop.f32.mrf.mxu3 }
 0x370   :  { %v591_v13 = vpop.f32.mrf.mxu3 }
 0x378   :  { %v594_v22 = vpop.f32.mrf.mxu3 }
 0x380   :  { %v596_v27 = vpop.f32.mrf.mxu3 }
 0x3b1   :  { %v632_v14 = vpop.f32.mrf.mxu1 }
 0x3b2   :  { %v633_v40 = vadd.f32 %v632_v14, %v579_v8 }
 0x3b4   :  { %v656_v42 = vadd.f32 %v928_v15, %v633_v40 }
 0x3b6   :  { %v673_v46 = vmul.f32 %v672_v43, %v656_v42  ;;  %vm664_vm6 = vcmp.gt.f32.partialorder %v656_v42, 0.0 }
 0x3b8   :  { %v681_v49 = vsel %vm664_vm6, %v656_v42, %v673_v46 }
 0x3b9   :  { %v634_v44 = vpop.f32.mrf.mxu1 }
 0x3ba   :  { %v635_v45 = vadd.f32 %v634_v44, %v581_v39 }
 0x3bc   :  { %v657_v47 = vadd.f32 %v928_v15, %v635_v45 }
 0x3be   :  { %vm665_vm7 = vcmp.gt.f32.partialorder %v657_v47, 0.0  ;;  %v674_v48 = vmul.f32 %v672_v43, %v657_v47 }
 0x3c0   :  { %v682_v54 = vsel %vm665_vm7, %v657_v47, %v674_v48 }
 0x3c1   :  { %v637_v56 = vpop.f32.mrf.mxu1  ;;  %v689_v59 = vpack.c.bf16 %v682_v54, %v681_v49 }
 0x3c2   :  { %v638_v60 = vadd.f32 %v637_v56, %v584_v41 }
 0x3c3   :  { %894 = vmatmul.msk.bf16.vlgmr.msrb.gmra.mxu0 %vm360_vm12, %v689_v59 }
 0x3c4   :  { %v658_v61 = vadd.f32 %v928_v15, %v638_v60 }
 0x3c6   :  { %v675_v3 = vmul.f32 %v672_v43, %v658_v61  ;;  %vm666_vm8 = vcmp.gt.f32.partialorder %v658_v61, 0.0 }
 0x3c8   :  { %v683_v6 = vsel %vm666_vm8, %v658_v61, %v675_v3 }
 0x3c9   :  { %v639_v62 = vpop.f32.mrf.mxu1 }
 0x3ca   :  { %v640_v63 = vadd.f32 %v639_v62, %v586_v55 }
 0x3cc   :  { %v659_v4 = vadd.f32 %v928_v15, %v640_v63 }
 0x3ce   :  { %vm667_vm9 = vcmp.gt.f32.partialorder %v659_v4, 0.0  ;;  %v676_v5 = vmul.f32 %v672_v43, %v659_v4 }
 0x3d0   :  { %v684_v9 = vsel %vm667_vm9, %v659_v4, %v676_v5 }
 0x3d1   :  { %v642_v10 = vpop.f32.mrf.mxu1  ;;  %v690_v11 = vpack.c.bf16 %v684_v9, %v683_v6 }
 0x3d2   :  { %v643_v12 = vadd.f32 %v642_v10, %v589_v2 }
 0x3d3   :  { %895 = vmatmul.msk.bf16.gmra.mxu0 %vm360_vm12, %v690_v11 }
 0x3d4   :  { %v660_v16 = vadd.f32 %v928_v15, %v643_v12 }
 0x3d6   :  { %v677_v19 = vmul.f32 %v672_v43, %v660_v16  ;;  %vm668_vm10 = vcmp.gt.f32.partialorder %v660_v16, 0.0 }
 0x3d8   :  { %v685_v23 = vsel %vm668_vm10, %v660_v16, %v677_v19 }
 0x3d9   :  { %v644_v17 = vpop.f32.mrf.mxu1 }
 0x3da   :  { %v645_v18 = vadd.f32 %v644_v17, %v591_v13 }
 0x3dc   :  { %v661_v20 = vadd.f32 %v928_v15, %v645_v18 }
 0x3de   :  { %vm669_vm11 = vcmp.gt.f32.partialorder %v661_v20, 0.0  ;;  %v678_v21 = vmul.f32 %v672_v43, %v661_v20 }
 0x3e0   :  { %v686_v24 = vsel %vm669_vm11, %v661_v20, %v678_v21 }
 0x3e1   :  { %v647_v25 = vpop.f32.mrf.mxu1  ;;  %v691_v50 = vpack.c.bf16 %v686_v24, %v685_v23 }
 0x3e2   :  { %v648_v26 = vadd.f32 %v647_v25, %v594_v22 }
 0x3e3   :  { %896 = vmatmul.msk.bf16.gmra.mxu0 %vm360_vm12, %v691_v50 }
 0x3e4   :  { %v662_v51 = vadd.f32 %v928_v15, %v648_v26 }
 0x3e6   :  { %v679_v28 = vmul.f32 %v672_v43, %v662_v51  ;;  %vm670_vm13 = vcmp.gt.f32.partialorder %v662_v51, 0.0 }
 0x3e8   :  { %v687_v31 = vsel %vm670_vm13, %v662_v51, %v679_v28 }
 0x3e9   :  { %v649_v52 = vpop.f32.mrf.mxu1 }
 0x3ea   :  { %v650_v53 = vadd.f32 %v649_v52, %v596_v27 }
 0x3ec   :  { %v663_v29 = vadd.f32 %v928_v15, %v650_v53 }
 0x3ee   :  { %vm671_vm14 = vcmp.gt.f32.partialorder %v663_v29, 0.0  ;;  %v680_v30 = vmul.f32 %v672_v43, %v663_v29 }
 0x3f0   :  { %v688_v32 = vsel %vm671_vm14, %v663_v29, %v680_v30 }
 0x3f1   :  { %v692_v33 = vpack.c.bf16 %v688_v32, %v687_v31 }
 0x3f3   :  { %897 = vmatmul.msk.bf16.vlgmr.msra.gmra.mxu2 %vm360_vm12, %v692_v33 }
 0x440   :  { %v734_v57 = vpop.f32.mrf.mxu0 }
 0x441   :  { %v735_v35 = vadd.f32 %v929_v34, %v734_v57 }
 0x443   :  { %754 = vst [vmem:[%s1250_s14] sm:$0xff] %v735_v35 }
 0x448   :  { %v736_v58 = vpop.f32.mrf.mxu0 }
 0x449   :  { %v737_v36 = vadd.f32 %v929_v34, %v736_v58 }
 0x44b   :  { %755 = vst [vmem:[%s1250_s14 + $0x8] sm:$0xff] %v737_v36 }
 0x450   :  { %v739_v37 = vpop.f32.mrf.mxu0 }
 0x451   :  { %v740_v1 = vadd.f32 %v929_v34, %v739_v37 }
 0x453   :  { %756 = vst [vmem:[%s1250_s14 + $0x10] sm:$0xff] %v740_v1 }
 0x458   :  { %v741_v38 = vpop.f32.mrf.mxu0 }
 0x459   :  { %v742_v0 = vadd.f32 %v929_v34, %v741_v38 }
 0x45b   :  { %757 = vst [vmem:[%s1250_s14 + $0x18] sm:$0xff] %v742_v0 }
 0x460   :  { %v744_v7 = vpop.f32.mrf.mxu0 }
 0x461   :  { %v745_v8 = vadd.f32 %v929_v34, %v744_v7 }
 0x463   :  { %758 = vst [vmem:[%s1250_s14 + $0x20] sm:$0xff] %v745_v8 }
 0x468   :  { %v746_v39 = vpop.f32.mrf.mxu0 }
 0x469   :  { %v747_v14 = vadd.f32 %v929_v34, %v746_v39 }
 0x46b   :  { %759 = vst [vmem:[%s1250_s14 + $0x28] sm:$0xff] %v747_v14 }
 0x476   :  { %v749_v40 = vpop.f32.mrf.mxu2 }
 0x477   :  { %v750_v15 = vadd.f32 %v929_v34, %v749_v40 }
 0x479   :  { %760 = vst [vmem:[%s1250_s14 + $0x30] sm:$0xff] %v750_v15 }
 0x47e   :  { %v751_v41 = vpop.f32.mrf.mxu2 }
 0x47f   :  { %v752_v42 = vadd.f32 %v929_v34, %v751_v41 }
 0x481   :  { %761 = vst [vmem:[%s1250_s14 + $0x38] sm:$0xff] %v752_v42 }

</bundles_post_ra>
